<compile_context>
chip_gen: v6e
topology: v6e:2x2x1
jax: 0.10.0
libtpu: 0.0.40
codegen_flags: <defaults>
</compile_context>

<pallas_src>
import jax
import jax.numpy as jnp
from jax.experimental import pallas as pl
from jax.experimental.pallas import tpu as pltpu


def _round_up(a: int, b: int) -> int:
    return ((a + b - 1) // b) * b


def _pad2d(a, rows, cols):
    r, c = a.shape
    if r == rows and c == cols:
        return a
    return jnp.zeros((rows, cols), a.dtype).at[:r, :c].set(a)


# ---------------------------------------------------------------------------
# Kernel
# ---------------------------------------------------------------------------
def _ffn_step(x_ref, w1_ref, b1_ref, w2_ref, b2_ref, o_ref, acc_ref):
    # x_ref : (TM, D)   w1_ref: (D, TF)   b1_ref: (1, TF) f32
    # w2_ref: (TF, D)   b2_ref: (1, D) f32   o_ref: (TM, D)   acc_ref: (TM, D) f32
    j = pl.program_id(1)

    @pl.when(j == 0)
    def _():
        acc_ref[...] = jnp.zeros_like(acc_ref)

    # First matmul chunk + bias + ReLU (epilogue stays in f32).
    h = jnp.dot(x_ref[...], w1_ref[...], preferred_element_type=jnp.float32)
    h = jnp.maximum(h + b1_ref[...], 0.0)
    # TODO(synk): training-mode dropout would mask `h` here with
    # pltpu.prng_seed + pltpu.prng_random_bits; eval mode (identity) is what we do.

    # Second matmul chunk, accumulated in f32 across the d_ff grid axis.
    acc_ref[...] += jnp.dot(h.astype(w2_ref.dtype), w2_ref[...],
                            preferred_element_type=jnp.float32)

    @pl.when(j == pl.num_programs(1) - 1)
    def _():
        o_ref[...] = (acc_ref[...] + b2_ref[...]).astype(o_ref.dtype)


def _ffn_kernel_acc_in_out(x_ref, w1_ref, b1_ref, w2_ref, b2_ref, o_ref):
    # f32 output: accumulate directly into the resident output block (no scratch).
    _ffn_step(x_ref, w1_ref, b1_ref, w2_ref, b2_ref, o_ref, o_ref)


def _ffn_kernel_scratch_acc(x_ref, w1_ref, b1_ref, w2_ref, b2_ref, o_ref, acc_ref):
    _ffn_step(x_ref, w1_ref, b1_ref, w2_ref, b2_ref, o_ref, acc_ref)


# ---------------------------------------------------------------------------
# Tiling / VMEM budgeting
# ---------------------------------------------------------------------------
def _vmem_estimate(tm, tf, d_pad, in_itemsize, out_itemsize, use_scratch):
    return (
        1 * tm * d_pad * in_itemsize          # x block (single-buffered, j-invariant)
        + 2 * d_pad * tf * in_itemsize        # W1 blocks (double-buffered)
        + 2 * tf * 4                          # b1 blocks (f32)
        + 2 * tf * d_pad * in_itemsize        # W2 blocks (double-buffered)
        + 2 * d_pad * 4                       # b2 blocks (f32)
        + 2 * tm * d_pad * out_itemsize       # output blocks
        + (tm * d_pad * 4 if use_scratch else 0)   # f32 accumulator scratch
        + tm * tf * 4                         # h intermediate (f32, staged in VMEM)
    )


def _select_tiles(M, d_pad, f_total, in_itemsize, out_itemsize, use_scratch,
                  vmem_budget, tile_m_req, tile_ff_req):
    # Keep >= 2 row tiles when possible so the "parallel" M axis shards across
    # both TensorCores on v7x.
    tm_cap = max(8, _round_up((M + 1) // 2, 8))
    tm = max(8, min(_round_up(tile_m_req, 8), tm_cap))
    tf = max(128, min(_round_up(tile_ff_req, 128), f_total))
    while _vmem_estimate(tm, tf, d_pad, in_itemsize, out_itemsize, use_scratch) > vmem_budget:
        if tm >= tf and tm > 256:
            tm = max(256, _round_up(tm // 2, 8))
        elif tf > 256:
            tf = max(128, _round_up(tf // 2, 128))
        elif tm > 8:
            tm = max(8, _round_up(tm // 2, 8))
        elif tf > 128:
            tf = max(128, _round_up(tf // 2, 128))
        else:
            break
    return tm, tf


# ---------------------------------------------------------------------------
# Wrapper
# ---------------------------------------------------------------------------
def feed_forward(x, w1, b1, w2, b2, *, tile_m=1024, tile_ff=512,
                 compute_dtype=None, weight_buffers=2, training=False):
    """Eval-mode FeedForward: lin2(dropout(relu(lin1(x)))), dropout == identity.

    x: [B, S, d_model]; w1: [d_model, d_ff] (= lin1.weight.T); b1: [d_ff];
    w2: [d_ff, d_model] (= lin2.weight.T); b2: [d_model].
    compute_dtype: optional MXU dtype (e.g. jnp.bfloat16) for x/W1/W2; accumulation
    is always f32 and biases are applied in f32.
    """
    if training:
        # TODO(synk): training-mode dropout (random mask + 1/(1-p) scale) not implemented.
        raise NotImplementedError("only eval-mode dropout (identity) is implemented")

    B, S, d_model = x.shape
    d_ff = w1.shape[1]
    M = B * S

    out_dtype = x.dtype
    in_dtype = jnp.dtype(compute_dtype) if compute_dtype is not None else jnp.dtype(x.dtype)
    in_itemsize = in_dtype.itemsize
    out_itemsize = jnp.dtype(out_dtype).itemsize
    acc_in_output = (jnp.dtype(out_dtype) == jnp.dtype(jnp.float32))

    # Generation-aware VMEM budget (v5e/v6e: 128 MiB, v7x: 64 MiB per TensorCore).
    try:
        vmem_cap = int(pltpu.get_tpu_info().vmem_capacity_bytes)
    except Exception:
        vmem_cap = 64 << 20  # conservative fallback (v7x-sized)
    vmem_budget = int(0.85 * vmem_cap)

    d_pad = _round_up(d_model, 128)          # lane-dense output / MXU columns
    f_total = _round_up(d_ff, 128)
    tm, tf = _select_tiles(M, d_pad, f_total, in_itemsize, out_itemsize,
                           not acc_in_output, vmem_budget, tile_m, tile_ff)
    m_pad = _round_up(M, tm)
    f_pad = _round_up(f_total, tf)
    grid = (m_pad // tm, f_pad // tf)

    # Pads are no-ops when shapes are already aligned; zero padding along
    # d_model / d_ff contributes 0 to the accumulation, padded M rows are
    # sliced off at the end.
    x_p = _pad2d(x.reshape(M, d_model), m_pad, d_pad).astype(in_dtype)
    w1_p = _pad2d(w1, d_pad, f_pad).astype(in_dtype)
    w2_p = _pad2d(w2, f_pad, d_pad).astype(in_dtype)
    b1_p = _pad2d(b1.reshape(1, d_ff).astype(jnp.float32), 1, f_pad)
    b2_p = _pad2d(b2.reshape(1, d_model).astype(jnp.float32), 1, d_pad)

    est_vmem = _vmem_estimate(tm, tf, d_pad, in_itemsize, out_itemsize, not acc_in_output)
    vmem_limit = min(vmem_budget, max(int(1.5 * est_vmem), 32 << 20))

    cost = pl.CostEstimate(
        flops=4 * M * d_model * d_ff,                       # two matmuls
        transcendentals=0,
        bytes_accessed=(x_p.size * in_itemsize
                        + grid[0] * (w1_p.size + w2_p.size) * in_itemsize  # per M tile
                        + (b1_p.size + b2_p.size) * 4
                        + m_pad * d_pad * out_itemsize),
    )

    kernel = _ffn_kernel_acc_in_out if acc_in_output else _ffn_kernel_scratch_acc
    scratch = [] if acc_in_output else [pltpu.VMEM((tm, d_pad), jnp.float32)]
    w_mode = {} if weight_buffers == 2 else {"pipeline_mode": pl.Buffered(weight_buffers)}

    def build(x_single_buffered):
        x_mode = {"pipeline_mode": pl.Buffered(1)} if x_single_buffered else {}
        return pl.pallas_call(
            kernel,
            out_shape=jax.ShapeDtypeStruct((m_pad, d_pad), out_dtype),
            grid_spec=pltpu.PrefetchScalarGridSpec(
                num_scalar_prefetch=0,
                grid=grid,
                in_specs=[
                    pl.BlockSpec((tm, d_pad), lambda i, j: (i, 0), **x_mode),   # x rows
                    pl.BlockSpec((d_pad, tf), lambda i, j: (0, j), **w_mode),   # W1 cols
                    pl.BlockSpec((1, tf), lambda i, j: (0, j)),                 # b1 chunk
                    pl.BlockSpec((tf, d_pad), lambda i, j: (j, 0), **w_mode),   # W2 rows
                    pl.BlockSpec((1, d_pad), lambda i, j: (0, 0)),              # b2
                ],
                out_specs=pl.BlockSpec((tm, d_pad), lambda i, j: (i, 0)),
                scratch_shapes=scratch,
            ),
            compiler_params=pltpu.CompilerParams(
                dimension_semantics=("parallel", "arbitrary"),
                vmem_limit_bytes=vmem_limit,
            ),
            cost_estimate=cost,
        )

    try:
        out_p = build(x_single_buffered=True)(x_p, w1_p, b1_p, w2_p, b2_p)
    except Exception:
        # Fallback if single-buffering (pl.Buffered(1)) is rejected by this version.
        out_p = build(x_single_buffered=False)(x_p, w1_p, b1_p, w2_p, b2_p)

    return out_p[:M, :d_model].reshape(B, S, d_model)


# ---------------------------------------------------------------------------
# Self-test
# ---------------------------------------------------------------------------
if __name__ == "__main__":
    # Small shapes consistent with the module: batch=2, seq=8, d_model=32, d_ff=64.
    B, S, d_model, d_ff = 2, 8, 32, 64

    key = jax.random.PRNGKey(0)
    kx, kw1, kb1, kw2, kb2 = jax.random.split(key, 5)

    x = jax.random.normal(kx, (B, S, d_model), dtype=jnp.float32)

    # Deterministic init mimicking nn.Linear's uniform(-1/sqrt(fan_in), 1/sqrt(fan_in)).
    lim1 = 1.0 / float(d_model) ** 0.5
    lim2 = 1.0 / float(d_ff) ** 0.5
    w1 = jax.random.uniform(kw1, (d_model, d_ff), jnp.float32, -lim1, lim1)   # = lin1.weight.T
    b1 = jax.random.uniform(kb1, (d_ff,), jnp.float32, -lim1, lim1)
    w2 = jax.random.uniform(kw2, (d_ff, d_model), jnp.float32, -lim2, lim2)   # = lin2.weight.T
    b2 = jax.random.uniform(kb2, (d_model,), jnp.float32, -lim2, lim2)

    # Reference (eval-mode semantics: dropout is identity).
    ref = jnp.maximum(x @ w1 + b1, 0.0) @ w2 + b2

    # f32 path (matches the PyTorch module numerically).
    out = jax.block_until_ready(feed_forward(x, w1, b1, w2, b2))
    assert out.shape == (B, S, d_model)
    assert jnp.allclose(out, ref, atol=1e-5, rtol=1e-5), \
        float(jnp.max(jnp.abs(out - ref)))

    # bf16-MXU path with f32 accumulation (looser tolerance vs the f32 reference).
    out_bf16 = jax.block_until_ready(
        feed_forward(x, w1, b1, w2, b2, compute_dtype=jnp.bfloat16))
    assert out_bf16.shape == (B, S, d_model)
    assert jnp.allclose(out_bf16, ref, atol=5e-2, rtol=5e-2), \
        float(jnp.max(jnp.abs(out_bf16 - ref)))

    print("KERNEL_OK")
</pallas_src>

<mosaic_0001>
module attributes {stable_mosaic.version = 11 : i64} {
  func.func @_ffn_kernel_acc_in_out(%arg0: i32, %arg1: i32, %arg2: memref<8x128xf32, #tpu.memory_space<vmem>>, %arg3: memref<128x128xf32, #tpu.memory_space<vmem>>, %arg4: memref<1x128xf32, #tpu.memory_space<vmem>>, %arg5: memref<128x128xf32, #tpu.memory_space<vmem>>, %arg6: memref<1x128xf32, #tpu.memory_space<vmem>>, %arg7: memref<8x128xf32, #tpu.memory_space<vmem>>) attributes {dimension_semantics = [#tpu.dimension_semantics<parallel>, #tpu.dimension_semantics<arbitrary>], iteration_bounds = array<i64: 2, 1>, scalar_prefetch = 0 : i64, scratch_operands = 0 : i64, tpu.core_type = #tpu.core_type<tc>, window_params = [{pipeline_mode = #tpu.pipeline_mode<synchronous>, transform_indices = @transform_0, window_bounds = array<i64: 8, 128>}, {transform_indices = @transform_1, window_bounds = array<i64: 128, 128>}, {transform_indices = @transform_2, window_bounds = array<i64: 1, 128>}, {transform_indices = @transform_3, window_bounds = array<i64: 128, 128>}, {pipeline_mode = #tpu.pipeline_mode<synchronous>, transform_indices = @transform_4, window_bounds = array<i64: 1, 128>}, {transform_indices = @transform_5, window_bounds = array<i64: 8, 128>}]} {
    %c0_i32 = arith.constant 0 : i32
    %0 = arith.cmpi eq, %arg1, %c0_i32 : i32
    %1 = arith.extui %0 : i1 to i32
    %c0_i32_0 = arith.constant 0 : i32
    %2 = arith.cmpi ne, %1, %c0_i32_0 : i32
    scf.if %2 {
      %cst_16 = arith.constant 0.000000e+00 : f32
      %19 = vector.broadcast %cst_16 : f32 to vector<8x128xf32>
      %c0_17 = arith.constant 0 : index
      %c0_18 = arith.constant 0 : index
      %20 = vector.load %arg7[%c0_17, %c0_18] : memref<8x128xf32, #tpu.memory_space<vmem>>, vector<8x128xf32>
      tpu.vector_store %arg7[%c0_17, %c0_18], %19 {strides = array<i32>} : memref<8x128xf32, #tpu.memory_space<vmem>>, vector<8x128xf32>,
    } else {
    }
    %c0 = arith.constant 0 : index
    %c0_1 = arith.constant 0 : index
    %3 = vector.load %arg2[%c0, %c0_1] : memref<8x128xf32, #tpu.memory_space<vmem>>, vector<8x128xf32>
    %c0_2 = arith.constant 0 : index
    %c0_3 = arith.constant 0 : index
    %4 = vector.load %arg3[%c0_2, %c0_3] : memref<128x128xf32, #tpu.memory_space<vmem>>, vector<128x128xf32>
    %cst = arith.constant dense<0.000000e+00> : vector<8x128xf32>
    %5 = tpu.matmul %3, %4, %cst {dimension_numbers = #tpu.dot_dimension_numbers<[1], [0], [0], [1], [0, 0, 1, 1], [], []>} : vector<8x128xf32>, vector<128x128xf32>, vector<8x128xf32> -> vector<8x128xf32>
    %c0_4 = arith.constant 0 : index
    %c0_5 = arith.constant 0 : index
    %6 = vector.load %arg4[%c0_4, %c0_5] : memref<1x128xf32, #tpu.memory_space<vmem>>, vector<1x128xf32>
    %7 = vector.broadcast %6 : vector<1x128xf32> to vector<8x128xf32>
    %8 = arith.addf %5, %7 : vector<8x128xf32>
    %cst_6 = arith.constant 0.000000e+00 : f32
    %9 = vector.broadcast %cst_6 : f32 to vector<8x128xf32>
    %10 = arith.maximumf %8, %9 : vector<8x128xf32>
    %c0_7 = arith.constant 0 : index
    %c0_8 = arith.constant 0 : index
    %11 = vector.load %arg7[%c0_7, %c0_8] : memref<8x128xf32, #tpu.memory_space<vmem>>, vector<8x128xf32>
    %c0_9 = arith.constant 0 : index
    %c0_10 = arith.constant 0 : index
    %12 = vector.load %arg5[%c0_9, %c0_10] : memref<128x128xf32, #tpu.memory_space<vmem>>, vector<128x128xf32>
    %cst_11 = arith.constant dense<0.000000e+00> : vector<8x128xf32>
    %13 = tpu.matmul %10, %12, %cst_11 {dimension_numbers = #tpu.dot_dimension_numbers<[1], [0], [0], [1], [0, 0, 1, 1], [], []>} : vector<8x128xf32>, vector<128x128xf32>, vector<8x128xf32> -> vector<8x128xf32>
    %14 = arith.addf %11, %13 : vector<8x128xf32>
    %c0_12 = arith.constant 0 : index
    %c0_13 = arith.constant 0 : index
    %15 = vector.load %arg7[%c0_12, %c0_13] : memref<8x128xf32, #tpu.memory_space<vmem>>, vector<8x128xf32>
    tpu.vector_store %arg7[%c0_12, %c0_13], %14 {strides = array<i32>} : memref<8x128xf32, #tpu.memory_space<vmem>>, vector<8x128xf32>,
    %c0_i32_14 = arith.constant 0 : i32
    %16 = arith.cmpi eq, %arg1, %c0_i32_14 : i32
    %17 = arith.extui %16 : i1 to i32
    %c0_i32_15 = arith.constant 0 : i32
    %18 = arith.cmpi ne, %17, %c0_i32_15 : i32
    scf.if %18 {
      %c0_16 = arith.constant 0 : index
      %c0_17 = arith.constant 0 : index
      %19 = vector.load %arg7[%c0_16, %c0_17] : memref<8x128xf32, #tpu.memory_space<vmem>>, vector<8x128xf32>
      %c0_18 = arith.constant 0 : index
      %c0_19 = arith.constant 0 : index
      %20 = vector.load %arg6[%c0_18, %c0_19] : memref<1x128xf32, #tpu.memory_space<vmem>>, vector<1x128xf32>
      %21 = vector.broadcast %20 : vector<1x128xf32> to vector<8x128xf32>
      %22 = arith.addf %19, %21 : vector<8x128xf32>
      %c0_20 = arith.constant 0 : index
      %c0_21 = arith.constant 0 : index
      %23 = vector.load %arg7[%c0_20, %c0_21] : memref<8x128xf32, #tpu.memory_space<vmem>>, vector<8x128xf32>
      tpu.vector_store %arg7[%c0_20, %c0_21], %22 {strides = array<i32>} : memref<8x128xf32, #tpu.memory_space<vmem>>, vector<8x128xf32>,
    } else {
    }
    return
  }
  func.func @transform_0(%arg0: i32, %arg1: i32) -> (i32, i32) {
    %c0_i32 = arith.constant 0 : i32
    %c0_i32_0 = arith.constant 0 : i32
    return %arg0, %c0_i32 : i32, i32
  }
  func.func @transform_1(%arg0: i32, %arg1: i32) -> (i32, i32) {
    %c0_i32 = arith.constant 0 : i32
    %c0_i32_0 = arith.constant 0 : i32
    return %c0_i32, %arg1 : i32, i32
  }
  func.func @transform_2(%arg0: i32, %arg1: i32) -> (i32, i32) {
    %c0_i32 = arith.constant 0 : i32
    %c0_i32_0 = arith.constant 0 : i32
    return %c0_i32, %arg1 : i32, i32
  }
  func.func @transform_3(%arg0: i32, %arg1: i32) -> (i32, i32) {
    %c0_i32 = arith.constant 0 : i32
    %c0_i32_0 = arith.constant 0 : i32
    return %arg1, %c0_i32 : i32, i32
  }
  func.func @transform_4(%arg0: i32, %arg1: i32) -> (i32, i32) {
    %c0_i32 = arith.constant 0 : i32
    %c0_i32_0 = arith.constant 0 : i32
    %c0_i32_1 = arith.constant 0 : i32
    return %c0_i32, %c0_i32_0 : i32, i32
  }
  func.func @transform_5(%arg0: i32, %arg1: i32) -> (i32, i32) {
    %c0_i32 = arith.constant 0 : i32
    %c0_i32_0 = arith.constant 0 : i32
    return %arg0, %c0_i32 : i32, i32
  }
}

module attributes {stable_mosaic.version = 11 : i64} {
  func.func @_ffn_kernel_acc_in_out(%arg0: i32, %arg1: i32, %arg2: memref<8x128xf32, #tpu.memory_space<vmem>>, %arg3: memref<128x128xf32, #tpu.memory_space<vmem>>, %arg4: memref<1x128xf32, #tpu.memory_space<vmem>>, %arg5: memref<128x128xf32, #tpu.memory_space<vmem>>, %arg6: memref<1x128xf32, #tpu.memory_space<vmem>>, %arg7: memref<8x128xf32, #tpu.memory_space<vmem>>) attributes {dimension_semantics = [#tpu.dimension_semantics<parallel>, #tpu.dimension_semantics<arbitrary>], iteration_bounds = array<i64: 2, 1>, scalar_prefetch = 0 : i64, scratch_operands = 0 : i64, tpu.core_type = #tpu.core_type<tc>, window_params = [{transform_indices = @transform_0, window_bounds = array<i64: 8, 128>}, {transform_indices = @transform_1, window_bounds = array<i64: 128, 128>}, {transform_indices = @transform_2, window_bounds = array<i64: 1, 128>}, {transform_indices = @transform_3, window_bounds = array<i64: 128, 128>}, {pipeline_mode = #tpu.pipeline_mode<synchronous>, transform_indices = @transform_4, window_bounds = array<i64: 1, 128>}, {transform_indices = @transform_5, window_bounds = array<i64: 8, 128>}]} {
    %c0_i32 = arith.constant 0 : i32
    %0 = arith.cmpi eq, %arg1, %c0_i32 : i32
    %1 = arith.extui %0 : i1 to i32
    %c0_i32_0 = arith.constant 0 : i32
    %2 = arith.cmpi ne, %1, %c0_i32_0 : i32
    scf.if %2 {
      %cst_16 = arith.constant 0.000000e+00 : f32
      %19 = vector.broadcast %cst_16 : f32 to vector<8x128xf32>
      %c0_17 = arith.constant 0 : index
      %c0_18 = arith.constant 0 : index
      %20 = vector.load %arg7[%c0_17, %c0_18] : memref<8x128xf32, #tpu.memory_space<vmem>>, vector<8x128xf32>
      tpu.vector_store %arg7[%c0_17, %c0_18], %19 {strides = array<i32>} : memref<8x128xf32, #tpu.memory_space<vmem>>, vector<8x128xf32>,
    } else {
    }
    %c0 = arith.constant 0 : index
    %c0_1 = arith.constant 0 : index
    %3 = vector.load %arg2[%c0, %c0_1] : memref<8x128xf32, #tpu.memory_space<vmem>>, vector<8x128xf32>
    %c0_2 = arith.constant 0 : index
    %c0_3 = arith.constant 0 : index
    %4 = vector.load %arg3[%c0_2, %c0_3] : memref<128x128xf32, #tpu.memory_space<vmem>>, vector<128x128xf32>
    %cst = arith.constant dense<0.000000e+00> : vector<8x128xf32>
    %5 = tpu.matmul %3, %4, %cst {dimension_numbers = #tpu.dot_dimension_numbers<[1], [0], [0], [1], [0, 0, 1, 1], [], []>} : vector<8x128xf32>, vector<128x128xf32>, vector<8x128xf32> -> vector<8x128xf32>
    %c0_4 = arith.constant 0 : index
    %c0_5 = arith.constant 0 : index
    %6 = vector.load %arg4[%c0_4, %c0_5] : memref<1x128xf32, #tpu.memory_space<vmem>>, vector<1x128xf32>
    %7 = vector.broadcast %6 : vector<1x128xf32> to vector<8x128xf32>
    %8 = arith.addf %5, %7 : vector<8x128xf32>
    %cst_6 = arith.constant 0.000000e+00 : f32
    %9 = vector.broadcast %cst_6 : f32 to vector<8x128xf32>
    %10 = arith.maximumf %8, %9 : vector<8x128xf32>
    %c0_7 = arith.constant 0 : index
    %c0_8 = arith.constant 0 : index
    %11 = vector.load %arg7[%c0_7, %c0_8] : memref<8x128xf32, #tpu.memory_space<vmem>>, vector<8x128xf32>
    %c0_9 = arith.constant 0 : index
    %c0_10 = arith.constant 0 : index
    %12 = vector.load %arg5[%c0_9, %c0_10] : memref<128x128xf32, #tpu.memory_space<vmem>>, vector<128x128xf32>
    %cst_11 = arith.constant dense<0.000000e+00> : vector<8x128xf32>
    %13 = tpu.matmul %10, %12, %cst_11 {dimension_numbers = #tpu.dot_dimension_numbers<[1], [0], [0], [1], [0, 0, 1, 1], [], []>} : vector<8x128xf32>, vector<128x128xf32>, vector<8x128xf32> -> vector<8x128xf32>
    %14 = arith.addf %11, %13 : vector<8x128xf32>
    %c0_12 = arith.constant 0 : index
    %c0_13 = arith.constant 0 : index
    %15 = vector.load %arg7[%c0_12, %c0_13] : memref<8x128xf32, #tpu.memory_space<vmem>>, vector<8x128xf32>
    tpu.vector_store %arg7[%c0_12, %c0_13], %14 {strides = array<i32>} : memref<8x128xf32, #tpu.memory_space<vmem>>, vector<8x128xf32>,
    %c0_i32_14 = arith.constant 0 : i32
    %16 = arith.cmpi eq, %arg1, %c0_i32_14 : i32
    %17 = arith.extui %16 : i1 to i32
    %c0_i32_15 = arith.constant 0 : i32
    %18 = arith.cmpi ne, %17, %c0_i32_15 : i32
    scf.if %18 {
      %c0_16 = arith.constant 0 : index
      %c0_17 = arith.constant 0 : index
      %19 = vector.load %arg7[%c0_16, %c0_17] : memref<8x128xf32, #tpu.memory_space<vmem>>, vector<8x128xf32>
      %c0_18 = arith.constant 0 : index
      %c0_19 = arith.constant 0 : index
      %20 = vector.load %arg6[%c0_18, %c0_19] : memref<1x128xf32, #tpu.memory_space<vmem>>, vector<1x128xf32>
      %21 = vector.broadcast %20 : vector<1x128xf32> to vector<8x128xf32>
      %22 = arith.addf %19, %21 : vector<8x128xf32>
      %c0_20 = arith.constant 0 : index
      %c0_21 = arith.constant 0 : index
      %23 = vector.load %arg7[%c0_20, %c0_21] : memref<8x128xf32, #tpu.memory_space<vmem>>, vector<8x128xf32>
      tpu.vector_store %arg7[%c0_20, %c0_21], %22 {strides = array<i32>} : memref<8x128xf32, #tpu.memory_space<vmem>>, vector<8x128xf32>,
    } else {
    }
    return
  }
  func.func @transform_0(%arg0: i32, %arg1: i32) -> (i32, i32) {
    %c0_i32 = arith.constant 0 : i32
    %c0_i32_0 = arith.constant 0 : i32
    return %arg0, %c0_i32 : i32, i32
  }
  func.func @transform_1(%arg0: i32, %arg1: i32) -> (i32, i32) {
    %c0_i32 = arith.constant 0 : i32
    %c0_i32_0 = arith.constant 0 : i32
    return %c0_i32, %arg1 : i32, i32
  }
  func.func @transform_2(%arg0: i32, %arg1: i32) -> (i32, i32) {
    %c0_i32 = arith.constant 0 : i32
    %c0_i32_0 = arith.constant 0 : i32
    return %c0_i32, %arg1 : i32, i32
  }
  func.func @transform_3(%arg0: i32, %arg1: i32) -> (i32, i32) {
    %c0_i32 = arith.constant 0 : i32
    %c0_i32_0 = arith.constant 0 : i32
    return %arg1, %c0_i32 : i32, i32
  }
  func.func @transform_4(%arg0: i32, %arg1: i32) -> (i32, i32) {
    %c0_i32 = arith.constant 0 : i32
    %c0_i32_0 = arith.constant 0 : i32
    %c0_i32_1 = arith.constant 0 : i32
    return %c0_i32, %c0_i32_0 : i32, i32
  }
  func.func @transform_5(%arg0: i32, %arg1: i32) -> (i32, i32) {
    %c0_i32 = arith.constant 0 : i32
    %c0_i32_0 = arith.constant 0 : i32
    return %arg0, %c0_i32 : i32, i32
  }
}

</mosaic_0001>

<bundles_post_ra>
// kernel: tpu_custom_call.1
= control target key start
LH: loop header
LB: loop body
LE: loop exit
PB: predicated region body
PF: predicated region fallthrough
CT: control target
= control target key end

     0   :  { %s1244_s0 = inlined_call_operand.hbm [shape: f32[16,128], index: 0, kind: input, shape index: {}]   ;;  %s1245_s1 = inlined_call_operand.hbm [shape: f32[128,128], index: 1, kind: input, shape index: {}]   ;;  %s1246_s2 = inlined_call_operand.vmem [shape: f32[1,128], index: 2, kind: input, shape index: {}]   ;;  %s1247_s3 = inlined_call_operand.hbm [shape: f32[128,128], index: 3, kind: input, shape index: {}]   ;;  %s1248_s4 = inlined_call_operand.vmem [shape: f32[1,128], index: 4, kind: input, shape index: {}]   ;;  %s1249_s5 = inlined_call_operand.hbm [shape: f32[16,128], index: 5, kind: output, shape index: {}]  }
   0x1   :  { %1262 = sst [smem:[#allocation12_spill]] %s1245_s1 }
   0x2   :  { %10 = vsyncpa [#allocation3], 0 }
   0x3   :  { %11 = vsyncpa [#allocation6], 0 }
   0x4   :  { %12 = vsyncpa [#allocation4], 0 }
   0x5   :  { %14 = vsyncpa [#allocation4 + $0x1], 0  ;;  %s1025_s18 = smov 0   ;;  %s1027_s19 = smov 0  }
   0x6   :  { %s1029_s20 = smov 0   ;;  %s1031_s21 = smov 0  }
   0x7   :  { %s1033_s22 = smov 0   ;;  %s1035_s23 = smov 0  }
   0x8 LB: > { %s987_s24 = smov [#allocation5]   ;;  %s614_s26 = sadd.s32 4294967295, %s985_s23   ;;  %s985_s23 = sphi %s1035_s23, %s20_s23   ;;  %s981_s22 = sphi %s1033_s22, %s1285_s22   ;;  %s977_s21 = sphi %s1031_s21, %s1284_s21   ;;  %s973_s20 = sphi %s1029_s20, %s1283_s20   ;;  %s969_s19 = sphi %s1027_s19, %s1282_s19   ;;  %s965_s18 = sphi %s1025_s18, %s1281_s18  }
   0x9   : > { %s215_s25 = sshll.u32 %s987_s24, 4  ;;  %p616_p0 = scmp.ge.s32.totalorder %s985_s23, 1  ;;  %s216_s25 = int_to_ptr.vmem [resolvable:$true] %s215_s25 }
   0xa   : > { %p1057_p1 = scmp.eq.s32.totalorder %s614_s26, 0  ;;  %p188_p2 = scmp.lt.s32.totalorder %s985_s23, 3 }
   0xb   : > { %s832_s30 = scalar_lea.vmem %s216_s25, 2048  ;;  %p840_p10 = scmp.lt.s32.totalorder %s216_s25, %s216_s25 }
   0xc   : > { %s1263_s27 = scalar_select %p1057_p1, 1, 0 }
   0xd   : > { %p1062_p3 = pnand %p616_p0, %p188_p2  ;;  %p833_p7 = scmp.ne.s32.totalorder %s216_s25, %s832_s30 }
   0xe   : > { %p841_p11 = scmp.lt.s32.totalorder %s832_s30, %s832_s30 }
   0xf   : > { %s1264_s28 = scalar_select %p1062_p3, 1, 0 }
  0x10   : > { %p747_p4 = pneg %p1062_p3  ;;  %p842_p12 = por %p841_p11, %p840_p10 }
  0x12   : > { %p1073_p5 = pnand %p747_p4, %p1057_p1 }
  0x14   : > { %s1265_s29 = scalar_select %p1073_p5, 1, 0 }
  0x15   : > { %p1253_p6 = pneg %p1073_p5 }
  0x17   : > { %p835_p8 = pnand %p833_p7, %p1253_p6 }
  0x19   : > { %p836_p9 = pneg %p835_p8 }
  0x1b   : > { %p843_p13 = pnand %p842_p12, %p836_p9 }
  0x1d   : > { %846 = shalt.err (!%p843_p13)
}
  0x1e   : > { %s1250_s6 = smov 128   ;;  %s1252_s7 = smov 8  }
  0x1f   : > { %s1266_s1 = sld [smem:[#allocation12_spill]]  ;;  %s615_s10 = sadd.s32 4294967294, %s985_s23  }
  0x20   : > { %s32_s11 = sadd.s32 1, %s981_s22  ;;  %s39_s12 = sadd.s32 1, %s973_s20 }
  0x21   : > { %p34_p0 = scmp.ge.s32.totalorder %s32_s11, 2  ;;  %p52_p2 = scmp.ne.s32.totalorder %s969_s19, %s965_s18 }
  0x22   : > { %p174_p7 = scmp.ne.s32.totalorder %s973_s20, %s969_s19  ;;  %p175_p9 = scmp.eq.s32.totalorder %s614_s26, 1 }
  0x23   : > { %s1287_s11 = smov (%p34_p0, %s32_s11), 0  ;;  %p1101_p8 = por %p1057_p1, %p52_p2 }
  0x24   : > { %s36_s14 = ssub.s32 %s981_s22, %s1287_s11  ;;  %p181_p10 = scmp.eq.s32.totalorder %s615_s10, 1 }
  0x25   : > { %753 = dma.hbm_to_vmem [thread:$0]  (!%p1073_p5), %s1266_s1, 2048, %s216_s25, [#allocation6], %s1250_s6, %s1250_s6, %s1252_s7  }
  0x26   : > { %s1267_s13 = scalar_select %p1101_p8, 1, 0 }
  0x27   : > { %p37_p11 = scmp.eq.s32.totalorder %s36_s14, 0  ;;  %p1107_p12 = por %p175_p9, %p174_p7 }
  0x28   : > { %p1111_p13 = por %p181_p10, %p52_p2  ;;  %s1251_s17 = sshll.u32 %s977_s21, 7 }
  0x29   : > { %s1268_s15 = scalar_select %p1107_p12, 1, 0 }
  0x2a   : > { %s1269_s16 = scalar_select %p1111_p13, 1, 0 }
  0x2b   : > { %s1117_s24 = scalar_select %p37_p11, %s973_s20, %s39_s12  }
  0x2c   : > { %s201_s8 = scalar_lea.hbm %s1244_s0, %s1251_s17  ;;  %s990_s26 = smov [#allocation2]  }
  0x2d   : > { %s203_s9 = sshll.u32 %s990_s26, 4  ;;  %p1129_p0 = pnand %p747_p4, %p1101_p8  ;;  %s204_s9 = int_to_ptr.vmem [resolvable:$true] %s203_s9 }
  0x2e   : > { %s991_s14 = smov [#allocation7]   ;;  %s847_s12 = scalar_lea.hbm %s201_s8, 128 }
  0x2f   : > { %s237_s6 = sshll.u32 %s991_s14, 4  ;;  %p848_p2 = scmp.ne.s32.totalorder %s201_s8, %s847_s12  ;;  %s238_s6 = int_to_ptr.vmem [resolvable:$true] %s237_s6 }
  0x30   : > { %p849_p7 = pneg %p1129_p0  ;;  %s852_s26 = scalar_lea.hbm %s1244_s0, 256 }
  0x31   : > { %p853_p4 = scmp.lt.s32.totalorder %s201_s8, %s1244_s0  ;;  %p854_p11 = scmp.lt.s32.totalorder %s852_s26, %s847_s12 }
  0x32   : > { %p850_p9 = pnand %p849_p7, %p848_p2 }
  0x33   : > { %p855_p6 = por %p854_p11, %p853_p4 }
  0x34   : > { %p851_p10 = pneg %p850_p9 }
  0x36   : > { %p856_p13 = pnand %p855_p6, %p851_p10 }
  0x38   : > { %859 = shalt.err (!%p856_p13)
}
  0x39   : > { %s860_s1 = scalar_lea.vmem %s204_s9, 128  ;;  %p868_p3 = scmp.lt.s32.totalorder %s204_s9, %s204_s9 }
  0x3a   : > { %p861_p12 = scmp.ne.s32.totalorder %s204_s9, %s860_s1  ;;  %p869_p5 = scmp.lt.s32.totalorder %s860_s1, %s860_s1 }
  0x3c   : > { %p863_p1 = pnand %p861_p12, %p849_p7  ;;  %p870_p2 = por %p869_p5, %p868_p3 }
  0x3e   : > { %p864_p8 = pneg %p863_p1 }
  0x40   : > { %p871_p9 = pnand %p870_p2, %p864_p8 }
  0x42   : > { %874 = shalt.err (!%p871_p9)
}
  0x43   : > { %750 = dma.hbm_to_vmem [thread:$0]  (!%p1129_p0), %s201_s8, 128, %s204_s9, [#allocation3]  }
  0x44   : > { %s886_s7 = scalar_lea.vmem %s238_s6, 2048  ;;  %p1271_p11 = scmp.ne.s32.totalorder %s1265_s29, 0 }
  0x45   : > { %p887_p4 = scmp.ne.s32.totalorder %s238_s6, %s886_s7  ;;  %p894_p7 = scmp.lt.s32.totalorder %s238_s6, %s238_s6 }
  0x46   : > { %p1272_p6 = pneg %p1271_p11  ;;  %p895_p12 = scmp.lt.s32.totalorder %s886_s7, %s886_s7 }
  0x48   : > { %p889_p10 = pnand %p887_p4, %p1272_p6  ;;  %p896_p1 = por %p895_p12, %p894_p7 }
  0x4a   : > { %p890_p13 = pneg %p889_p10 }
  0x4c   : > { %p897_p3 = pnand %p896_p1, %p890_p13 }
  0x4e   : > { %900 = shalt.err (!%p897_p3)
}
  0x4f   : > { %s1273_s1 = smov 8   ;;  %s1274_s17 = smov 128  }
  0x50   : > { %756 = dma.hbm_to_vmem [thread:$0]  (!%p1271_p11), %s1247_s3, 2048, %s238_s6, [#allocation6], %s1274_s17, %s1274_s17, %s1273_s1  }
  0x51   : > { %p1275_p5 = scmp.ne.s32.totalorder %s1264_s28, 0 }
  0x52   : > { %p1276_p8 = scmp.ne.s32.totalorder (!%p1275_p5), %s1267_s13, 0 }
  0x53   : > { %256 = sbr.rel (%p1275_p5) target bundleno = 531 (0x213), region = 40 }
  0x58   : > { %952 = dma.done.wait (%p1276_p8), [#allocation3], 128  }
  0x59   : > { %954 = vsyncadd (%p1276_p8), [#allocation3], 4294967168  ;;  %p1277_p0 = scmp.ne.s32.totalorder %s1263_s27, 0 }
  0x5b   : > { %956 = dma.done.wait (%p1277_p0), [#allocation6], 4096  }
  0x5c   : > { %958 = vsyncadd (%p1277_p0), [#allocation6], 4294963200  ;;  %v992_v0 = vmov 0.0   ;;  %vm993_vm0 = vmmov 0   ;;  %v315_v1 = vld [vmem:[#allocation5 + $0x78] sm:$0xff]  ;;  %v314_v2 = vld [vmem:[#allocation5 + $0x70] sm:$0xff] }
  0x5d   : > { %665 = vmatprep.subr.mxu0 %v992_v0  ;;  %697 = vmatprep.mubr.msk.f32.mxu0 %vm993_vm0, %v992_v0  ;;  %v313_v3 = vld [vmem:[#allocation5 + $0x68] sm:$0xff]  ;;  %v312_v4 = vld [vmem:[#allocation5 + $0x60] sm:$0xff]  ;;  %v410_v5 = vld [vmem:[#allocation7 + $0x78] sm:$0xff]  ;;  %s287_s29 = sand.u32 1, %s969_s19   ;;  %s1278_s25 = sshll.u32 %s977_s21, 7 }
  0x5e   : > { %700 = vmatprep.subr.mxu1 %v992_v0  ;;  %732 = vmatprep.mubr.msk.f32.mxu1 %vm993_vm0, %v992_v0  ;;  %v311_v6 = vld [vmem:[#allocation5 + $0x58] sm:$0xff]  ;;  %v409_v7 = vld [vmem:[#allocation7 + $0x70] sm:$0xff]  ;;  %v408_v8 = vld [vmem:[#allocation7 + $0x68] sm:$0xff]  ;;  %s624_s6 = sshll.u32 %s287_s29, 3  ;;  %s508_s7 = scalar_lea.hbm %s1249_s5, %s1278_s25 }
  0x5f   : > { %666 = vmatpush3.msra.mxu0 %v315_v1  ;;  %701 = vmatpush3.msra.mxu1 %v410_v5  ;;  %v310_v9 = vld [vmem:[#allocation5 + $0x50] sm:$0xff]  ;;  %v407_v10 = vld [vmem:[#allocation7 + $0x60] sm:$0xff]  ;;  %v309_v11 = vld [vmem:[#allocation5 + $0x48] sm:$0xff]  ;;  %s289_s9 = scalar_lea.vmem [#allocation8], %s624_s6  ;;  %s497_s1 = scalar_lea.sflag [#allocation4], %s287_s29 }
  0x60   : > { %667 = vmatprep.subr.mxu0 %v992_v0  ;;  %702 = vmatprep.subr.mxu1 %v992_v0  ;;  %v406_v12 = vld [vmem:[#allocation7 + $0x58] sm:$0xff]  ;;  %v308_v13 = vld [vmem:[#allocation5 + $0x40] sm:$0xff]  ;;  %v405_v14 = vld [vmem:[#allocation7 + $0x50] sm:$0xff]  ;;  %s510_s12 = sshll.u32 %s289_s9, 4  ;;  %p1279_p9 = scmp.ne.s32.totalorder %s1268_s15, 0  ;;  %s511_s12 = int_to_ptr.vmem [resolvable:$true] %s510_s12 }
  0x61   : > { %668 = vmatpush3.msra.mxu0 %v314_v2  ;;  %703 = vmatpush3.msra.mxu1 %v409_v7  ;;  %v307_v15 = vld [vmem:[#allocation5 + $0x38] sm:$0xff]  ;;  %v404_v16 = vld [vmem:[#allocation7 + $0x48] sm:$0xff]  ;;  %v306_v17 = vld [vmem:[#allocation5 + $0x30] sm:$0xff]  ;;  %s901_s17 = scalar_lea.vmem %s511_s12, 128  ;;  %s994_s10 = smov [#allocation8]  }
  0x62   : > { %669 = vmatprep.subr.mxu0 %v992_v0  ;;  %704 = vmatprep.subr.mxu1 %v992_v0  ;;  %v403_v18 = vld [vmem:[#allocation7 + $0x40] sm:$0xff]  ;;  %v305_v19 = vld [vmem:[#allocation5 + $0x28] sm:$0xff]  ;;  %v402_v20 = vld [vmem:[#allocation7 + $0x38] sm:$0xff]  ;;  %p902_p2 = scmp.ne.s32.totalorder %s511_s12, %s901_s17  ;;  %s905_s14 = sshll.u32 %s994_s10, 4  ;;  %s906_s14 = int_to_ptr.vmem [resolvable:$false] %s905_s14 }
  0x63   : > { %670 = vmatpush3.msra.mxu0 %v313_v3  ;;  %705 = vmatpush3.msra.mxu1 %v408_v8  ;;  %v304_v21 = vld [vmem:[#allocation5 + $0x20] sm:$0xff]  ;;  %v401_v22 = vld [vmem:[#allocation7 + $0x30] sm:$0xff]  ;;  %v303_v23 = vld [vmem:[#allocation5 + $0x18] sm:$0xff]  ;;  %s907_s27 = scalar_lea.vmem %s906_s14, 256  ;;  %p908_p6 = scmp.lt.s32.totalorder %s511_s12, %s906_s14 }
  0x64   : > { %671 = vmatprep.subr.mxu0 %v992_v0  ;;  %706 = vmatprep.subr.mxu1 %v992_v0  ;;  %v400_v24 = vld [vmem:[#allocation7 + $0x28] sm:$0xff]  ;;  %v302_v25 = vld [vmem:[#allocation5 + $0x10] sm:$0xff]  ;;  %v399_v26 = vld [vmem:[#allocation7 + $0x20] sm:$0xff]  ;;  %p903_p4 = pnand %p902_p2, %p1279_p9  ;;  %p909_p10 = scmp.lt.s32.totalorder %s907_s27, %s901_s17 }
  0x65   : > { %672 = vmatpush3.msra.mxu0 %v312_v4  ;;  %707 = vmatpush3.msra.mxu1 %v407_v10  ;;  %v301_v27 = vld [vmem:[#allocation5 + $0x8] sm:$0xff]  ;;  %v398_v28 = vld [vmem:[#allocation7 + $0x18] sm:$0xff]  ;;  %v300_v29 = vld [vmem:[#allocation5] sm:$0xff] }
  0x66   : > { %673 = vmatprep.subr.mxu0 %v992_v0  ;;  %708 = vmatprep.subr.mxu1 %v992_v0  ;;  %v299_v30 = vld [vmem:[#allocation2] sm:$0xff]  ;;  %v397_v31 = vld [vmem:[#allocation7 + $0x10] sm:$0xff]  ;;  %v396_v32 = vld [vmem:[#allocation7 + $0x8] sm:$0xff]  ;;  %p904_p11 = pneg %p903_p4  ;;  %p910_p13 = por %p909_p10, %p908_p6 }
  0x67   : > { %674 = vmatpush3.msra.mxu0 %v311_v6  ;;  %709 = vmatpush3.msra.mxu1 %v406_v12  ;;  %v395_v33 = vld [vmem:[#allocation7] sm:$0xff]  ;;  %v625_v34 = vld [vmem:[%s1246_s2] ss:$0 sm:$0xff] }
  0x68   : > { %675 = vmatprep.subr.mxu0 %v992_v0  ;;  %710 = vmatprep.subr.mxu1 %v992_v0  ;;  %v626_v40 = vld [vmem:[%s1248_s4] ss:$0 sm:$0xff]  ;;  %p911_p7 = pnand %p910_p13, %p904_p11 }
  0x69   : > { %676 = vmatpush3.msra.mxu0 %v310_v9  ;;  %711 = vmatpush3.msra.mxu1 %v405_v14 }
  0x6a   : > { %677 = vmatprep.subr.mxu0 %v992_v0  ;;  %712 = vmatprep.subr.mxu1 %v992_v0 }
  0x6b   : > { %678 = vmatpush3.msra.mxu0 %v309_v11  ;;  %713 = vmatpush3.msra.mxu1 %v404_v16 }
  0x6c   : > { %679 = vmatprep.subr.mxu0 %v992_v0  ;;  %714 = vmatprep.subr.mxu1 %v992_v0 }
  0x6d   : > { %680 = vmatpush3.msra.mxu0 %v308_v13  ;;  %715 = vmatpush3.msra.mxu1 %v403_v18 }
  0x6e   : > { %681 = vmatprep.subr.mxu0 %v992_v0  ;;  %716 = vmatprep.subr.mxu1 %v992_v0 }
  0x6f   : > { %682 = vmatpush3.msra.mxu0 %v307_v15  ;;  %717 = vmatpush3.msra.mxu1 %v402_v20 }
  0x70   : > { %683 = vmatprep.subr.mxu0 %v992_v0  ;;  %718 = vmatprep.subr.mxu1 %v992_v0 }
  0x71   : > { %684 = vmatpush3.msra.mxu0 %v306_v17  ;;  %719 = vmatpush3.msra.mxu1 %v401_v22 }
  0x72   : > { %685 = vmatprep.subr.mxu0 %v992_v0  ;;  %720 = vmatprep.subr.mxu1 %v992_v0 }
  0x73   : > { %686 = vmatpush3.msra.mxu0 %v305_v19  ;;  %721 = vmatpush3.msra.mxu1 %v400_v24 }
  0x74   : > { %687 = vmatprep.subr.mxu0 %v992_v0  ;;  %722 = vmatprep.subr.mxu1 %v992_v0 }
  0x75   : > { %688 = vmatpush3.msra.mxu0 %v304_v21  ;;  %723 = vmatpush3.msra.mxu1 %v399_v26 }
  0x76   : > { %689 = vmatprep.subr.mxu0 %v992_v0  ;;  %724 = vmatprep.subr.mxu1 %v992_v0 }
  0x77   : > { %690 = vmatpush3.msra.mxu0 %v303_v23  ;;  %725 = vmatpush3.msra.mxu1 %v398_v28 }
  0x78   : > { %691 = vmatprep.subr.mxu0 %v992_v0  ;;  %726 = vmatprep.subr.mxu1 %v992_v0 }
  0x79   : > { %692 = vmatpush3.msra.mxu0 %v302_v25  ;;  %727 = vmatpush3.msra.mxu1 %v397_v31 }
  0x7a   : > { %693 = vmatprep.subr.mxu0 %v992_v0  ;;  %728 = vmatprep.subr.mxu1 %v992_v0 }
  0x7b   : > { %694 = vmatpush3.msra.mxu0 %v301_v27  ;;  %729 = vmatpush3.msra.mxu1 %v396_v32 }
  0x7c   : > { %695 = vmatprep.subr.mxu0 %v992_v0  ;;  %730 = vmatprep.subr.mxu1 %v992_v0 }
  0x7d   : > { %696 = vmatpush3.msra.mxu0 %v300_v29  ;;  %731 = vmatpush3.msra.mxu1 %v395_v33 }
  0x7e   : > { %698 = vmatmul.mubr.f32.vlgmr.msra.gmra.mxu0 %v299_v30 }
 0x13e   : > { %v389_v35 = vpop.f32.mrf.mxu0 }
 0x13f   : > { %v390_v36 = vadd.f32 %v625_v34, %v389_v35 }
 0x140   : > { %v699_v37 = vpop.f32.mrf.mxu0 }
 0x141   : > { %v393_v38 = vmax.f32 %v390_v36, 0.0 }
 0x143   : > { %733 = vmatmul.mubr.f32.vlgmr.msra.gmra.mxu1 %v393_v38 }
 0x203   : > { %v477_v39 = vpop.f32.mrf.mxu1 }
 0x204   : > { %v494_v42 = vadd.f32 %v626_v40, %v477_v39 }
 0x205   : > { %v734_v41 = vpop.f32.mrf.mxu1 }
 0x206   : > { %495 = vst [vmem:[%s289_s9] sm:$0xff] %v494_v42 }
 0x207   : > { %914 = shalt.err (!%p911_p7)
}
 0x208   : > { %s915_s21 = scalar_lea.hbm %s508_s7, 128  ;;  %s919_s6 = scalar_lea.hbm %s1249_s5, 256 }
 0x209   : > { %p916_p12 = scmp.ne.s32.totalorder %s508_s7, %s915_s21  ;;  %p920_p5 = scmp.lt.s32.totalorder %s508_s7, %s1249_s5 }
 0x20a   : > { %p921_p8 = scmp.lt.s32.totalorder %s919_s6, %s915_s21 }
 0x20b   : > { %p917_p1 = pnand %p916_p12, %p1279_p9 }
 0x20c   : > { %p922_p0 = por %p921_p8, %p920_p5 }
 0x20d   : > { %p918_p3 = pneg %p917_p1 }
 0x20f   : > { %p923_p2 = pnand %p922_p0, %p918_p3 }
 0x211   : > { %926 = shalt.err (!%p923_p2)
}
 0x212   : > { %745 = dma.vmem_to_hbm [thread:$0]  (%p1279_p9), %s511_s12, 128, %s508_s7, %s497_s1  }
 0x213 PF: > { %p765_p4 = scmp.ge.s32.totalorder %s985_s23, 2  ;;  %s522_s9 = sand.u32 1, %s965_s18  }
 0x214   : > { %p1280_p11 = scmp.ne.s32.totalorder %s1269_s16, 0  ;;  %s523_s25 = scalar_lea.sflag [#allocation4], %s522_s9 }
 0x216   : > { %p758_p6 = pnand %p765_p4, %p1280_p11 }
 0x218   : > { %p759_p10 = pneg %p758_p6 }
 0x21a   : > { %960 = dma.done.wait (%p759_p10), %s523_s25, 128  }
 0x21b   : > { %962 = vsyncadd (%p759_p10), %s523_s25, 4294967168  ;;  %s20_s23 = sadd.s32 1, %s985_s23   ;;  %s1281_s18 = smov %s969_s19 }
 0x21c   : > { %p17_p13 = scmp.ge.s32.totalorder %s20_s23, 4   ;;  %s1282_s19 = smov %s973_s20 }
 0x21d   : > { %s1283_s20 = smov %s1117_s24  ;;  %s1284_s21 = smov %s981_s22 }
 0x21e   : > { %s1285_s22 = smov %s1287_s11  ;;  %19 = sbr.rel (!%p17_p13) target bundleno = 8 (0x8), region = 99 }
 0x223   :  { %528 = vsyncpa [#allocation3], 1 }
 0x224   :  { %530 = vsyncpa [#allocation3 + $0x1], 1 }
 0x225   :  { %531 = vsyncpa [#allocation6], 1 }
 0x226   :  { %532 = vsyncpa [#allocation4], 1 }
 0x227   :  { %534 = vsyncpa [#allocation4 + $0x1], 1 }

// kernel: tpu_custom_call.1
= control target key start
LH: loop header
LB: loop body
LE: loop exit
PB: predicated region body
PF: predicated region fallthrough
CT: control target
= control target key end

     0   :  { %s1276_s0 = inlined_call_operand.hbm [shape: f32[16,128], index: 0, kind: input, shape index: {}]   ;;  %s1277_s1 = inlined_call_operand.hbm [shape: f32[128,128], index: 1, kind: input, shape index: {}]   ;;  %s1278_s2 = inlined_call_operand.vmem [shape: f32[1,128], index: 2, kind: input, shape index: {}]   ;;  %s1279_s3 = inlined_call_operand.hbm [shape: f32[128,128], index: 3, kind: input, shape index: {}]   ;;  %s1280_s4 = inlined_call_operand.vmem [shape: f32[1,128], index: 4, kind: input, shape index: {}]   ;;  %s1281_s5 = inlined_call_operand.hbm [shape: f32[16,128], index: 5, kind: output, shape index: {}]  }
   0x1   :  { %1285 = sst [smem:[#allocation12_spill]] %s1277_s1 }
   0x2   :  { %10 = vsyncpa [#allocation3], 0 }
   0x3   :  { %12 = vsyncpa [#allocation3 + $0x1], 0 }
   0x4   :  { %13 = vsyncpa [#allocation6], 0 }
   0x5   :  { %14 = vsyncpa [#allocation4], 0 }
   0x6   :  { %16 = vsyncpa [#allocation4 + $0x1], 0  ;;  %s1055_s18 = smov 0   ;;  %s1057_s19 = smov 0  }
   0x7   :  { %s1059_s20 = smov 0   ;;  %s1061_s21 = smov 0  }
   0x8   :  { %s1063_s22 = smov 0   ;;  %s1065_s23 = smov 0  }
   0x9 LB: > { %s640_s24 = sadd.s32 4294967295, %s1015_s23   ;;  %s641_s25 = sadd.s32 4294967294, %s1015_s23   ;;  %s1015_s23 = sphi %s1065_s23, %s22_s23   ;;  %s1011_s22 = sphi %s1063_s22, %s1303_s22   ;;  %s1007_s21 = sphi %s1061_s21, %s1302_s21   ;;  %s1003_s20 = sphi %s1059_s20, %s1301_s20   ;;  %s999_s19 = sphi %s1057_s19, %s1300_s19   ;;  %s995_s18 = sphi %s1055_s18, %s1299_s18  }
   0xa   : > { %p54_p0 = scmp.ne.s32.totalorder %s999_s19, %s995_s18  ;;  %p1089_p1 = scmp.eq.s32.totalorder %s640_s24, 0 }
   0xb   : > { %p1093_p2 = scmp.eq.s32.totalorder %s640_s24, 1  ;;  %p183_p3 = scmp.eq.s32.totalorder %s641_s25, 1 }
   0xc   : > { %s1286_s26 = scalar_select %p1089_p1, 1, 0 }
   0xd   : > { %p1099_p4 = por %p1089_p1, %p54_p0  ;;  %p642_p5 = scmp.ge.s32.totalorder %s1015_s23, 1 }
   0xe   : > { %p1104_p6 = por %p183_p3, %p54_p0  ;;  %p190_p7 = scmp.lt.s32.totalorder %s1015_s23, 3 }
   0xf   : > { %s1288_s28 = scalar_select %p1099_p4, 1, 0 }
  0x10   : > { %s1289_s29 = scalar_select %p1104_p6, 1, 0 }
  0x11   : > { %p1109_p8 = pnand %p642_p5, %p190_p7  ;;  %s1017_s6 = smov [#allocation5]  }
  0x12   : > { %s204_s7 = sshll.u32 %s1017_s6, 4  ;;  %s1018_s9 = smov [#allocation7]   ;;  %s205_s7 = int_to_ptr.vmem [resolvable:$true] %s204_s7 }
  0x13   : > { %p776_p9 = pneg %p1109_p8  ;;  %s226_s10 = sshll.u32 %s1018_s9, 4  ;;  %s227_s10 = int_to_ptr.vmem [resolvable:$true] %s226_s10 }
  0x14   : > { %s862_s11 = scalar_lea.vmem %s205_s7, 2048  ;;  %p870_p5 = scmp.lt.s32.totalorder %s205_s7, %s205_s7 }
  0x15   : > { %p1118_p11 = pnand %p776_p9, %p1089_p1  ;;  %p863_p13 = scmp.ne.s32.totalorder %s205_s7, %s862_s11 }
  0x16   : > { %p871_p7 = scmp.lt.s32.totalorder %s862_s11, %s862_s11 }
  0x17   : > { %p853_p12 = pneg %p1118_p11 }
  0x18   : > { %p872_p10 = por %p871_p7, %p870_p5 }
  0x19   : > { %p865_p0 = pnand %p863_p13, %p853_p12 }
  0x1b   : > { %p866_p3 = pneg %p865_p0 }
  0x1d   : > { %p873_p9 = pnand %p872_p10, %p866_p3 }
  0x1f   : > { %876 = shalt.err (!%p873_p9)
}
  0x20   : > { %s1019_s12 = smov 128   ;;  %s1020_s13 = smov 8  }
  0x21   : > { %s1292_s1 = sld [smem:[#allocation12_spill]]  ;;  %s888_s16 = scalar_lea.vmem %s227_s10, 2048 }
  0x22   : > { %p889_p6 = scmp.ne.s32.totalorder %s227_s10, %s888_s16  ;;  %p896_p1 = scmp.lt.s32.totalorder %s227_s10, %s227_s10 }
  0x23   : > { %p897_p4 = scmp.lt.s32.totalorder %s888_s16, %s888_s16 }
  0x24   : > { %p891_p13 = pnand %p889_p6, %p853_p12 }
  0x25   : > { %p898_p5 = por %p897_p4, %p896_p1 }
  0x26   : > { %p892_p0 = pneg %p891_p13 }
  0x27   : > { %779 = dma.hbm_to_vmem [thread:$0]  (!%p1118_p11), %s1292_s1, 2048, %s205_s7, [#allocation6], %s1019_s12, %s1019_s12, %s1020_s13  }
  0x28   : > { %p899_p10 = pnand %p898_p5, %p892_p0 }
  0x2a   : > { %902 = shalt.err (!%p899_p10)
}
  0x2b   : > { %782 = dma.hbm_to_vmem [thread:$0]  (!%p1118_p11), %s1279_s3, 2048, %s227_s10, [#allocation6], %s1019_s12, %s1019_s12, %s1020_s13  }
  0x2c   : > { %s34_s25 = sadd.s32 1, %s1011_s22  ;;  %s41_s6 = sadd.s32 1, %s1003_s20 }
  0x2d   : > { %p36_p1 = scmp.ge.s32.totalorder %s34_s25, 2  ;;  %p48_p4 = scmp.ne.s32.totalorder %s1003_s20, %s999_s19 }
  0x2e   : > { %p49_p6 = scmp.eq.s32.totalorder %s1015_s23, 0  ;;  %p793_p12 = scmp.lt.s32.totalorder %s1015_s23, 2 }
  0x2f   : > { %s1305_s25 = smov (%p36_p1, %s34_s25), 0  ;;  %p1150_p7 = por %p1093_p2, %p48_p4 }
  0x30   : > { %p50_p3 = por %p49_p6, %p48_p4  ;;  %s38_s8 = ssub.s32 %s1011_s22, %s1305_s25 }
  0x31   : > { %s243_s9 = sand.u32 1, %s1003_s20   ;;  %p39_p9 = scmp.eq.s32.totalorder %s38_s8, 0 }
  0x32   : > { %s647_s10 = sshll.u32 %s243_s9, 3  ;;  %s648_s11 = sshll.u32 %s1011_s22, 7 }
  0x33   : > { %s1159_s12 = scalar_select %p39_p9, %s1003_s20, %s41_s6  }
  0x34   : > { %s252_s15 = scalar_lea.hbm %s1276_s0, %s648_s11  ;;  %s247_s16 = scalar_lea.vmem [#allocation2], %s647_s10 }
  0x35   : > { %s254_s17 = sshll.u32 %s247_s16, 4  ;;  %p1166_p11 = pnand %p793_p12, %p50_p3  ;;  %s255_s17 = int_to_ptr.vmem [resolvable:$true] %s254_s17 }
  0x36   : > { %s244_s24 = scalar_lea.sflag [#allocation3], %s243_s9  ;;  %s916_s8 = scalar_lea.vmem %s255_s17, 128 }
  0x37   : > { %p905_p2 = pneg %p1166_p11  ;;  %p917_p13 = scmp.ne.s32.totalorder %s255_s17, %s916_s8 }
  0x38   : > { %s1021_s6 = smov [#allocation2]  }
  0x39   : > { %p919_p0 = pnand %p917_p13, %p905_p2  ;;  %s921_s1 = sshll.u32 %s1021_s6, 4  ;;  %s922_s1 = int_to_ptr.vmem [resolvable:$false] %s921_s1 }
  0x3a   : > { %s923_s11 = scalar_lea.vmem %s922_s1, 256  ;;  %p924_p10 = scmp.lt.s32.totalorder %s255_s17, %s922_s1 }
  0x3b   : > { %p920_p5 = pneg %p919_p0  ;;  %p925_p1 = scmp.lt.s32.totalorder %s923_s11, %s916_s8 }
  0x3d   : > { %p926_p4 = por %p925_p1, %p924_p10 }
  0x3f   : > { %p927_p6 = pnand %p926_p4, %p920_p5 }
  0x41   : > { %930 = shalt.err (!%p927_p6)
}
  0x42   : > { %786 = dma.hbm_to_vmem [thread:$0]  (!%p1166_p11), %s252_s15, 128, %s255_s17, %s244_s24  }
  0x43   : > { %263 = sbr.rel (%p1109_p8) target bundleno = 515 (0x203), region = 40  ;;  %s1177_s9 = sand.u32 (!%p1109_p8), 1, %s999_s19  }
  0x44   : > { %s650_s10 = sshll.u32 (!%p1109_p8), %s1177_s9, 3  ;;  %s266_s13 = scalar_lea.sflag (!%p1109_p8), [#allocation3], %s1177_s9 }
  0x45   : > { %s1183_s1 = scalar_lea.vmem (!%p1109_p8), [#allocation2], %s650_s10  ;;  %p1295_p12 = scmp.ne.s32.totalorder (!%p1109_p8), %s1288_s28, 0 }
  0x48   : > { %982 = dma.done.wait (%p1295_p12), %s266_s13, 128  }
  0x49   : > { %984 = vsyncadd (%p1295_p12), %s266_s13, 4294967168  ;;  %p1296_p3 = scmp.ne.s32.totalorder %s1286_s26, 0 }
  0x4b   : > { %986 = dma.done.wait (%p1296_p3), [#allocation6], 4096  }
  0x4c   : > { %988 = vsyncadd (%p1296_p3), [#allocation6], 4294963200  ;;  %v1022_v0 = vmov 0.0   ;;  %vm1023_vm0 = vmmov 0   ;;  %v332_v1 = vld [vmem:[#allocation5 + $0x78] sm:$0xff]  ;;  %v331_v2 = vld [vmem:[#allocation5 + $0x70] sm:$0xff] }
  0x4d   : > { %694 = vmatprep.subr.mxu0 %v1022_v0  ;;  %726 = vmatprep.mubr.msk.f32.mxu0 %vm1023_vm0, %v1022_v0  ;;  %v330_v3 = vld [vmem:[#allocation5 + $0x68] sm:$0xff]  ;;  %v329_v4 = vld [vmem:[#allocation5 + $0x60] sm:$0xff]  ;;  %v427_v5 = vld [vmem:[#allocation7 + $0x78] sm:$0xff]  ;;  %s657_s15 = sshll.u32 %s1007_s21, 7  ;;  %s306_s16 = scalar_lea.vmem [#allocation8], %s650_s10 }
  0x4e   : > { %729 = vmatprep.subr.mxu1 %v1022_v0  ;;  %761 = vmatprep.mubr.msk.f32.mxu1 %vm1023_vm0, %v1022_v0  ;;  %v328_v6 = vld [vmem:[#allocation5 + $0x58] sm:$0xff]  ;;  %v426_v7 = vld [vmem:[#allocation7 + $0x70] sm:$0xff]  ;;  %v425_v8 = vld [vmem:[#allocation7 + $0x68] sm:$0xff]  ;;  %s527_s17 = sshll.u32 %s306_s16, 4  ;;  %s525_s8 = scalar_lea.hbm %s1281_s5, %s657_s15  ;;  %s528_s17 = int_to_ptr.vmem [resolvable:$true] %s527_s17 }
  0x4f   : > { %695 = vmatpush3.msra.mxu0 %v332_v1  ;;  %730 = vmatpush3.msra.mxu1 %v427_v5  ;;  %v327_v9 = vld [vmem:[#allocation5 + $0x50] sm:$0xff]  ;;  %v424_v10 = vld [vmem:[#allocation7 + $0x60] sm:$0xff]  ;;  %v326_v11 = vld [vmem:[#allocation5 + $0x48] sm:$0xff]  ;;  %s514_s6 = scalar_lea.sflag [#allocation4], %s1177_s9  ;;  %s931_s11 = scalar_lea.vmem %s528_s17, 128 }
  0x50   : > { %696 = vmatprep.subr.mxu0 %v1022_v0  ;;  %731 = vmatprep.subr.mxu1 %v1022_v0  ;;  %v423_v12 = vld [vmem:[#allocation7 + $0x58] sm:$0xff]  ;;  %v325_v13 = vld [vmem:[#allocation5 + $0x40] sm:$0xff]  ;;  %v422_v14 = vld [vmem:[#allocation7 + $0x50] sm:$0xff]  ;;  %p932_p8 = scmp.ne.s32.totalorder %s528_s17, %s931_s11  ;;  %s1024_s13 = smov [#allocation8]  }
  0x51   : > { %697 = vmatpush3.msra.mxu0 %v331_v2  ;;  %732 = vmatpush3.msra.mxu1 %v426_v7  ;;  %v324_v15 = vld [vmem:[#allocation5 + $0x38] sm:$0xff]  ;;  %v421_v16 = vld [vmem:[#allocation7 + $0x48] sm:$0xff]  ;;  %v323_v17 = vld [vmem:[#allocation5 + $0x30] sm:$0xff] }
  0x52   : > { %698 = vmatprep.subr.mxu0 %v1022_v0  ;;  %733 = vmatprep.subr.mxu1 %v1022_v0  ;;  %v420_v18 = vld [vmem:[#allocation7 + $0x40] sm:$0xff]  ;;  %v322_v19 = vld [vmem:[#allocation5 + $0x28] sm:$0xff]  ;;  %v419_v20 = vld [vmem:[#allocation7 + $0x38] sm:$0xff]  ;;  %p933_p9 = pnand %p932_p8, %p1150_p7 }
  0x53   : > { %699 = vmatpush3.msra.mxu0 %v330_v3  ;;  %734 = vmatpush3.msra.mxu1 %v425_v8  ;;  %v321_v21 = vld [vmem:[#allocation5 + $0x20] sm:$0xff]  ;;  %v418_v22 = vld [vmem:[#allocation7 + $0x30] sm:$0xff]  ;;  %v320_v23 = vld [vmem:[#allocation5 + $0x18] sm:$0xff] }
  0x54   : > { %700 = vmatprep.subr.mxu0 %v1022_v0  ;;  %735 = vmatprep.subr.mxu1 %v1022_v0  ;;  %v417_v24 = vld [vmem:[#allocation7 + $0x28] sm:$0xff]  ;;  %v319_v25 = vld [vmem:[#allocation5 + $0x10] sm:$0xff]  ;;  %v416_v26 = vld [vmem:[#allocation7 + $0x20] sm:$0xff]  ;;  %p934_p11 = pneg %p933_p9 }
  0x55   : > { %701 = vmatpush3.msra.mxu0 %v329_v4  ;;  %736 = vmatpush3.msra.mxu1 %v424_v10  ;;  %v318_v27 = vld [vmem:[#allocation5 + $0x8] sm:$0xff]  ;;  %v415_v28 = vld [vmem:[#allocation7 + $0x18] sm:$0xff]  ;;  %v317_v29 = vld [vmem:[#allocation5] sm:$0xff] }
  0x56   : > { %702 = vmatprep.subr.mxu0 %v1022_v0  ;;  %737 = vmatprep.subr.mxu1 %v1022_v0  ;;  %v316_v30 = vld [vmem:[%s1183_s1] sm:$0xff]  ;;  %v413_v32 = vld [vmem:[#allocation7 + $0x8] sm:$0xff]  ;;  %v412_v33 = vld [vmem:[#allocation7] sm:$0xff]  ;;  %s935_s1 = sshll.u32 %s1024_s13, 4  ;;  %s936_s1 = int_to_ptr.vmem [resolvable:$false] %s935_s1 }
  0x57   : > { %703 = vmatpush3.msra.mxu0 %v328_v6  ;;  %738 = vmatpush3.msra.mxu1 %v423_v12  ;;  %v414_v31 = vld [vmem:[#allocation7 + $0x10] sm:$0xff]  ;;  %s937_s21 = scalar_lea.vmem %s936_s1, 256  ;;  %p938_p2 = scmp.lt.s32.totalorder %s528_s17, %s936_s1 }
  0x58   : > { %704 = vmatprep.subr.mxu0 %v1022_v0  ;;  %739 = vmatprep.subr.mxu1 %v1022_v0  ;;  %v654_v34 = vld [vmem:[%s1278_s2] ss:$0 sm:$0xff]  ;;  %p939_p13 = scmp.lt.s32.totalorder %s937_s21, %s931_s11 }
  0x59   : > { %705 = vmatpush3.msra.mxu0 %v327_v9  ;;  %740 = vmatpush3.msra.mxu1 %v422_v14  ;;  %v655_v40 = vld [vmem:[%s1280_s4] ss:$0 sm:$0xff] }
  0x5a   : > { %706 = vmatprep.subr.mxu0 %v1022_v0  ;;  %741 = vmatprep.subr.mxu1 %v1022_v0  ;;  %p940_p0 = por %p939_p13, %p938_p2 }
  0x5b   : > { %707 = vmatpush3.msra.mxu0 %v326_v11  ;;  %742 = vmatpush3.msra.mxu1 %v421_v16 }
  0x5c   : > { %708 = vmatprep.subr.mxu0 %v1022_v0  ;;  %743 = vmatprep.subr.mxu1 %v1022_v0  ;;  %p941_p5 = pnand %p940_p0, %p934_p11 }
  0x5d   : > { %709 = vmatpush3.msra.mxu0 %v325_v13  ;;  %744 = vmatpush3.msra.mxu1 %v420_v18 }
  0x5e   : > { %710 = vmatprep.subr.mxu0 %v1022_v0  ;;  %745 = vmatprep.subr.mxu1 %v1022_v0 }
  0x5f   : > { %711 = vmatpush3.msra.mxu0 %v324_v15  ;;  %746 = vmatpush3.msra.mxu1 %v419_v20 }
  0x60   : > { %712 = vmatprep.subr.mxu0 %v1022_v0  ;;  %747 = vmatprep.subr.mxu1 %v1022_v0 }
  0x61   : > { %713 = vmatpush3.msra.mxu0 %v323_v17  ;;  %748 = vmatpush3.msra.mxu1 %v418_v22 }
  0x62   : > { %714 = vmatprep.subr.mxu0 %v1022_v0  ;;  %749 = vmatprep.subr.mxu1 %v1022_v0 }
  0x63   : > { %715 = vmatpush3.msra.mxu0 %v322_v19  ;;  %750 = vmatpush3.msra.mxu1 %v417_v24 }
  0x64   : > { %716 = vmatprep.subr.mxu0 %v1022_v0  ;;  %751 = vmatprep.subr.mxu1 %v1022_v0 }
  0x65   : > { %717 = vmatpush3.msra.mxu0 %v321_v21  ;;  %752 = vmatpush3.msra.mxu1 %v416_v26 }
  0x66   : > { %718 = vmatprep.subr.mxu0 %v1022_v0  ;;  %753 = vmatprep.subr.mxu1 %v1022_v0 }
  0x67   : > { %719 = vmatpush3.msra.mxu0 %v320_v23  ;;  %754 = vmatpush3.msra.mxu1 %v415_v28 }
  0x68   : > { %720 = vmatprep.subr.mxu0 %v1022_v0  ;;  %755 = vmatprep.subr.mxu1 %v1022_v0 }
  0x69   : > { %721 = vmatpush3.msra.mxu0 %v319_v25  ;;  %756 = vmatpush3.msra.mxu1 %v414_v31 }
  0x6a   : > { %722 = vmatprep.subr.mxu0 %v1022_v0  ;;  %757 = vmatprep.subr.mxu1 %v1022_v0 }
  0x6b   : > { %723 = vmatpush3.msra.mxu0 %v318_v27  ;;  %758 = vmatpush3.msra.mxu1 %v413_v32 }
  0x6c   : > { %724 = vmatprep.subr.mxu0 %v1022_v0  ;;  %759 = vmatprep.subr.mxu1 %v1022_v0 }
  0x6d   : > { %725 = vmatpush3.msra.mxu0 %v317_v29  ;;  %760 = vmatpush3.msra.mxu1 %v412_v33 }
  0x6e   : > { %727 = vmatmul.mubr.f32.vlgmr.msra.gmra.mxu0 %v316_v30 }
 0x12e   : > { %v406_v35 = vpop.f32.mrf.mxu0 }
 0x12f   : > { %v407_v36 = vadd.f32 %v654_v34, %v406_v35 }
 0x130   : > { %v728_v37 = vpop.f32.mrf.mxu0 }
 0x131   : > { %v410_v38 = vmax.f32 %v407_v36, 0.0 }
 0x133   : > { %762 = vmatmul.mubr.f32.vlgmr.msra.gmra.mxu1 %v410_v38 }
 0x1f3   : > { %v494_v39 = vpop.f32.mrf.mxu1 }
 0x1f4   : > { %v511_v42 = vadd.f32 %v655_v40, %v494_v39 }
 0x1f5   : > { %v763_v41 = vpop.f32.mrf.mxu1 }
 0x1f6   : > { %512 = vst [vmem:[%s306_s16] sm:$0xff] %v511_v42 }
 0x1f7   : > { %944 = shalt.err (!%p941_p5)
}
 0x1f8   : > { %s945_s10 = scalar_lea.hbm %s525_s8, 128  ;;  %s949_s28 = scalar_lea.hbm %s1281_s5, 256 }
 0x1f9   : > { %p946_p10 = scmp.ne.s32.totalorder %s525_s8, %s945_s10  ;;  %p950_p6 = scmp.lt.s32.totalorder %s525_s8, %s1281_s5 }
 0x1fa   : > { %p951_p12 = scmp.lt.s32.totalorder %s949_s28, %s945_s10 }
 0x1fb   : > { %p947_p1 = pnand %p946_p10, %p1150_p7 }
 0x1fc   : > { %p952_p3 = por %p951_p12, %p950_p6 }
 0x1fd   : > { %p948_p4 = pneg %p947_p1 }
 0x1ff   : > { %p953_p8 = pnand %p952_p3, %p948_p4 }
 0x201   : > { %956 = shalt.err (!%p953_p8)
}
 0x202   : > { %774 = dma.vmem_to_hbm [thread:$0]  (%p1150_p7), %s528_s17, 128, %s525_s8, %s514_s6  }
 0x203 PF: > { %s539_s15 = sand.u32 1, %s995_s18   ;;  %p1297_p9 = scmp.ne.s32.totalorder %s1289_s29, 0 }
 0x204   : > { %p1298_p11 = scmp.ge.s32.totalorder %s1015_s23, 2  ;;  %s540_s16 = scalar_lea.sflag [#allocation4], %s539_s15 }
 0x206   : > { %p788_p2 = pnand %p1298_p11, %p1297_p9 }
 0x208   : > { %p789_p13 = pneg %p788_p2 }
 0x20a   : > { %990 = dma.done.wait (%p789_p13), %s540_s16, 128  }
 0x20b   : > { %992 = vsyncadd (%p789_p13), %s540_s16, 4294967168  ;;  %s22_s23 = sadd.s32 1, %s1015_s23   ;;  %s1299_s18 = smov %s999_s19 }
 0x20c   : > { %p19_p0 = scmp.ge.s32.totalorder %s22_s23, 4   ;;  %s1300_s19 = smov %s1003_s20 }
 0x20d   : > { %s1301_s20 = smov %s1159_s12  ;;  %s1302_s21 = smov %s1011_s22 }
 0x20e   : > { %s1303_s22 = smov %s1305_s25  ;;  %21 = sbr.rel (!%p19_p0) target bundleno = 9 (0x9), region = 106 }
 0x213   :  { %545 = vsyncpa [#allocation3], 1 }
 0x214   :  { %547 = vsyncpa [#allocation3 + $0x1], 1 }
 0x215   :  { %548 = vsyncpa [#allocation6], 1 }
 0x216   :  { %549 = vsyncpa [#allocation4], 1 }
 0x217   :  { %551 = vsyncpa [#allocation4 + $0x1], 1 }

</bundles_post_ra>
